<compile_context>
chip_gen: v5e
topology: v5e:2x2
jax: 0.10.0
libtpu: 0.0.40
codegen_flags: <defaults>
</compile_context>

<pallas_src>
import functools
import math

import jax
import jax.numpy as jnp
from jax.experimental import pallas as pl
from jax.experimental.pallas import tpu as pltpu


def _vmem_capacity_bytes():
    """Best-effort physical VMEM size; falls back to the v7x-class 64 MiB."""
    try:
        info = pltpu.get_tpu_info()
        for name in ("vmem_capacity_bytes", "vmem_bytes", "vmem_size_bytes"):
            cap = getattr(info, name, None)
            if cap:
                return int(cap)
    except Exception:
        pass
    return 64 * 1024 * 1024


def _choose_blocks(B, N, H, hidden_budget_bytes):
    """Pick (batches per block Bb, i-rows per block TI).

    Targets (per perf review):
      * >= 2 grid steps along the parallel batch axis whenever B >= 2 (v7x has
        two TensorCores; a (1, 1) grid idles one of them),
      * up to a few thousand pair rows per grid step (amortizes ~0.35us/step,
        fills the MXU M dim, keeps stores past the tiling knee), subject to
      * the pairwise hidden tile (+ temps + matmul cast) staying inside the
        generation-aware VMEM budget,
      * i-tiles that keep scratch slices sublane aligned (TI % 8 == 0 or
        TI == N) and, preferably, lane aligned ((TI*N) % 128 == 0).
    """
    rows = N * N
    # ~12 bytes / hidden element: f32 hidden + broadcast temp + bf16 matmul cast.
    bytes_per_row = 12 * max(H, 1)
    rows_cap = max(N, min(8192, hidden_budget_bytes // bytes_per_row))

    # --- batch folding (keep >= 2 batch steps whenever B >= 2) ---
    bb_cap = B if B == 1 else max(1, B // 2)
    bb = 1
    for d in range(1, B + 1):
        if B % d == 0 and d <= bb_cap and d * rows <= max(rows, rows_cap):
            bb = d

    # --- i tiling (only when a single batch block over-runs the budget) ---
    ti = N
    if rows > rows_cap:
        bb = 1
        aligned, any8 = None, None
        for d in range(8, N, 8):                    # TI % 8 == 0, TI < N
            if N % d == 0 and d * N <= rows_cap:
                any8 = d
                if (d * N) % 128 == 0:
                    aligned = d
        ti = aligned if aligned is not None else any8
        if ti is None:
            # Best effort: no aligned divisor fits; fall back to TI == N and
            # rely on the raised vmem_limit_bytes for headroom.
            ti = N
    return bb, ti


def _readout_kernel(x_ref, wpool_ref, w1a_ref, w1bc_ref, b1_ref, w2x_ref,
                    b2_ref, out_ref, u_scr, c_scr, *, n_nodes, n_hidden,
                    out_dim, i_tile, merged):
    """One grid step: (batch block b) x (i-tile p) of the pair grid."""
    N, H, O, TI = n_nodes, n_hidden, out_dim, i_tile
    Bb = x_ref.shape[0]
    dt = wpool_ref.dtype                        # MXU input dtype (bf16 / f32)

    # ---- p-invariant work: once per batch block (first i-tile only) ----
    @pl.when(pl.program_id(1) == 0)
    def _hoist_p_invariant():
        x = x_ref[...].astype(jnp.float32)                       # (Bb, N, F)
        f_dim = x.shape[-1]
        xr = jnp.maximum(x, 0.0)                                  # relu(x)

        # pooled branch: mean over nodes -> Linear (no bias) -> relu -> @W1a,
        # with b1 folded in.
        pooled = jnp.sum(x, axis=1) * (1.0 / N)                   # (Bb, F)
        h_pooled = jnp.dot(pooled.astype(dt), wpool_ref[...],
                           preferred_element_type=jnp.float32)    # (Bb, F)
        base = jnp.dot(jnp.maximum(h_pooled, 0.0).astype(dt), w1a_ref[...],
                       preferred_element_type=jnp.float32) + b1_ref[...]

        # fused per-node matmul: [a | c] = relu(x) @ [W1b | W1c]  (cast once)
        ac = jnp.dot(xr.reshape(Bb * N, f_dim).astype(dt), w1bc_ref[...],
                     preferred_element_type=jnp.float32).reshape(Bb, N, 2 * H)
        a = ac[:, :, :H]                                          # i-contribs
        c = ac[:, :, H:]                                          # j-contribs

        # u[b, i, :] = base[b] + a[b, i]  (bias + pooled term folded in)
        u_scr[...] = (base[:, None, :] + a).astype(u_scr.dtype)
        if merged:
            # lane-merged c: c_flat[b, j*H + t] = c[b, j, t]
            c_scr[...] = jnp.concatenate(
                [c[:, j, :] for j in range(N)], axis=-1).astype(c_scr.dtype)
        else:
            c_scr[...] = c.astype(c_scr.dtype)

    # ---- per i-tile pairwise work ----
    if TI == N:
        u = u_scr[...]                                            # (Bb, TI, H)
    else:
        i0 = pl.multiple_of(pl.program_id(1) * TI, TI)
        u = u_scr[:, pl.ds(i0, TI), :]

    if merged:
        # Lane-merged hidden tile: h[b, i, j*H + t] = relu(u[b,i,t] + c[b,j,t])
        # -> full 128-lane occupancy for the broadcast-add + relu, and the w2
        # projection + segmented H-reduce fold into one MXU matmul against the
        # block-diagonal kron(I_N, w2) operand.
        ut = jnp.concatenate([u] * N, axis=-1)                    # (Bb,TI,N*H)
        h = jnp.maximum(ut + c_scr[...][:, None, :], 0)           # (Bb,TI,N*H)
        rows = jnp.dot(h.reshape(Bb * TI, N * H).astype(dt), w2x_ref[...],
                       preferred_element_type=jnp.float32)        # (Bb*TI, N)
        out = rows.reshape(Bb, TI, N) + b2_ref[...]
        out_ref[...] = out.astype(out_ref.dtype)                  # (Bb, TI, N)
    else:
        # TODO(synk): extend the lane-merged path to output_dim > 1 and to the
        # N >= 128 (j-on-lanes) regime; kept on the straightforward layout here.
        c = c_scr[...]                                            # (Bb, N, H)
        h = jnp.maximum(u[:, :, None, :] + c[:, None, :, :], 0)   # (Bb,TI,N,H)
        if O == 1:
            w2row = w2x_ref[...].reshape(1, 1, 1, H)
            out = jnp.sum(h.astype(jnp.float32) * w2row, axis=-1) + b2_ref[...]
            out_ref[...] = out.astype(out_ref.dtype)              # (Bb, TI, N)
        elif O <= 8:
            w2t = w2x_ref[...].astype(jnp.float32)                # (O, H)
            hf = h.astype(jnp.float32)
            chans = [jnp.sum(hf * w2t[o:o + 1, :].reshape(1, 1, 1, H), axis=-1)
                     for o in range(O)]                           # each (Bb,TI,N)
            out = jnp.stack(chans, axis=1) + b2_ref[...].reshape(1, O, 1, 1)
            out_ref[...] = out.astype(out_ref.dtype)              # (Bb,O,TI,N)
        else:
            hf = h.reshape(Bb, TI * N, H).reshape(Bb * TI * N, H).astype(dt)
            out = jnp.dot(hf, w2x_ref[...],
                          preferred_element_type=jnp.float32) + b2_ref[...]
            out_ref[...] = out.reshape(Bb, TI * N, O).astype(out_ref.dtype)


def readout_layer_multidim(node_embeddings, mask, params, *,
                           dot_dtype=jnp.bfloat16,
                           pairwise_dtype=jnp.float32):
    """Pallas implementation of ReadoutLayerMultidim.forward (n_hid=[H]).

    node_embeddings: (B, N, F) float32
    mask:            unused (the reference forward never touches it)
    params: 'w_pool' (F,F), 'w1' (3F,H), 'b1' (1,H), 'w2' (H,O), 'b2' (1,O)
            (Linear weights stored pre-transposed as (in, out): y = x @ W + b)
    dot_dtype:      MXU matmul input dtype (bf16 default, f32 accumulation).
    pairwise_dtype: dtype of the pairwise broadcast-add/relu stage (f32 default;
                    bf16 is a valid opt-in on v6e/v7x -- v5e VPU has no bf16).
    returns: (B, N, N, O) float32
    """
    del mask  # unused in the reference forward
    B, N, F = node_embeddings.shape
    w_pool, w1, b1, w2, b2 = (params["w_pool"], params["w1"], params["b1"],
                              params["w2"], params["b2"])
    H = w1.shape[1]
    O = w2.shape[1]
    assert w1.shape[0] == 3 * F and w_pool.shape == (F, F)

    # Generation-aware VMEM budgeting (v7x: 64 MiB physical -> ~8 MiB hidden
    # tile budget; v5e/v6e: 128 MiB -> ~16 MiB) + explicit scoped-VMEM raise.
    vmem_cap = _vmem_capacity_bytes()
    hidden_budget = max(vmem_cap // 8, 2 << 20)
    vmem_limit = int(min(vmem_cap * 3 // 4, 96 * 1024 * 1024))

    Bb, TI = _choose_blocks(B, N, H, hidden_budget)
    grid = (B // Bb, N // TI)

    # Lane-merged pairwise path (fixes <128-lane occupancy when H is small).
    merged = (O == 1) and (H < 128) and (N * H >= 128) and (N <= 64)

    # Split / fuse layer-1 weights: W1 = [W1a (pool); W1b (i); W1c (j)].
    w1a = w1[:F]
    w1bc = jnp.concatenate([w1[F:2 * F], w1[2 * F:]], axis=1)     # (F, 2H)

    x_in = node_embeddings.astype(jnp.float32)
    w_pool_in = w_pool.astype(dot_dtype)
    w1a_in = w1a.astype(dot_dtype)
    w1bc_in = w1bc.astype(dot_dtype)
    b1_in = b1.astype(jnp.float32).reshape(1, H)

    if merged:
        # Block-diagonal "scatter" weight folding the w2 projection and the
        # segmented H-reduce of the lane-merged hidden tile into one MXU matmul.
        w2x = jnp.kron(jnp.eye(N, dtype=jnp.float32),
                       w2[:, :1].astype(jnp.float32)).astype(dot_dtype)  # (N*H, N)
        b2x = b2.astype(jnp.float32).reshape(1, 1)
    elif O == 1:
        w2x = w2.astype(jnp.float32).reshape(1, H)                # VPU reduce
        b2x = b2.astype(jnp.float32).reshape(1, 1)
    elif O <= 8:
        w2x = w2.astype(jnp.float32).T                            # (O, H)
        b2x = b2.astype(jnp.float32).reshape(1, O)
    else:
        w2x = w2.astype(dot_dtype)                                # (H, O), MXU
        b2x = b2.astype(jnp.float32).reshape(1, O)

    if O == 1:
        out_shape = jax.ShapeDtypeStruct((B, N, N), jnp.float32)
        out_spec = pl.BlockSpec((Bb, TI, N), lambda b, p: (b, p, 0))
    elif O <= 8:
        out_shape = jax.ShapeDtypeStruct((B, O, N, N), jnp.float32)
        out_spec = pl.BlockSpec((Bb, O, TI, N), lambda b, p: (b, 0, p, 0))
    else:
        out_shape = jax.ShapeDtypeStruct((B, N * N, O), jnp.float32)
        out_spec = pl.BlockSpec((Bb, TI * N, O), lambda b, p: (b, p, 0))

    c_scr_shape = (Bb, N * H) if merged else (Bb, N, H)

    kernel = functools.partial(_readout_kernel, n_nodes=N, n_hidden=H,
                               out_dim=O, i_tile=TI, merged=merged)

    out = pl.pallas_call(
        kernel,
        out_shape=out_shape,
        grid_spec=pltpu.PrefetchScalarGridSpec(
            num_scalar_prefetch=0,
            grid=grid,
            in_specs=[
                pl.BlockSpec((Bb, N, F), lambda b, p: (b, 0, 0)),   # x
                pl.BlockSpec((F, F), lambda b, p: (0, 0)),          # pool W
                pl.BlockSpec((F, H), lambda b, p: (0, 0)),          # W1a
                pl.BlockSpec((F, 2 * H), lambda b, p: (0, 0)),      # W1b|W1c
                pl.BlockSpec((1, H), lambda b, p: (0, 0)),          # b1
                pl.BlockSpec(w2x.shape, lambda b, p: (0, 0)),       # layer-2 W
                pl.BlockSpec(b2x.shape, lambda b, p: (0, 0)),       # b2
            ],
            out_specs=out_spec,
            scratch_shapes=[
                pltpu.VMEM((Bb, N, H), pairwise_dtype),             # u = base+a
                pltpu.VMEM(c_scr_shape, pairwise_dtype),            # c (maybe flat)
            ],
        ),
        compiler_params=pltpu.CompilerParams(
            dimension_semantics=("parallel", "arbitrary"),
            vmem_limit_bytes=vmem_limit),
    )(x_in, w_pool_in, w1a_in, w1bc_in, b1_in, w2x, b2x)

    if O == 1:
        return out.reshape(B, N, N, 1)
    if O <= 8:
        return jnp.transpose(out, (0, 2, 3, 1))
    return out.reshape(B, N, N, O)


def readout_layer_multidim_ref(x, params):
    """Pure-JAX reference mirroring the PyTorch forward, for validation."""
    B, N, F = x.shape
    h_pooled = (x.sum(axis=1) / N) @ params["w_pool"]                       # (B, F)
    f_exp = jnp.broadcast_to(x[:, :, None, :], (B, N, N, F)).reshape(B, N * N, F)
    f_diff = jnp.broadcast_to(x[:, None, :, :], (B, N, N, F)).reshape(B, N * N, F)
    f_pool = jnp.broadcast_to(h_pooled[:, None, :], (B, N * N, F))
    feats = jax.nn.relu(jnp.concatenate([f_pool, f_exp, f_diff], axis=-1))
    h = jax.nn.relu(feats @ params["w1"] + params["b1"])
    out = h @ params["w2"] + params["b2"]
    return out.reshape(B, N, N, -1)


def init_params(key, n_features, n_hidden, output_dim):
    """Deterministic parameter init (Kaiming-uniform-ish, like nn.Linear)."""
    ks = jax.random.split(key, 5)

    def linear_w(k, n_in, n_out):
        bound = 1.0 / math.sqrt(n_in)
        # stored as (in, out) so the kernel does x @ W
        return jax.random.uniform(k, (n_in, n_out), jnp.float32, -bound, bound)

    def linear_b(k, n_in, n_out):
        bound = 1.0 / math.sqrt(n_in)
        return jax.random.uniform(k, (1, n_out), jnp.float32, -bound, bound)

    return {
        "w_pool": linear_w(ks[0], n_features, n_features),     # bias_pool=False
        "w1": linear_w(ks[1], 3 * n_features, n_hidden),
        "b1": linear_b(ks[2], 3 * n_features, n_hidden),
        "w2": linear_w(ks[3], n_hidden, output_dim),
        "b2": linear_b(ks[4], n_hidden, output_dim),
    }


if __name__ == "__main__":
    key = jax.random.PRNGKey(0)
    k1, k2, k3, k4, k5 = jax.random.split(key, 5)

    # ---- Case 1: output_dim=1 (lane-merged pairwise path, N*H = 256) ----
    B, N, F, H, O = 2, 8, 32, 32, 1       # n_features=32, n_hid=[32]
    x = jax.random.normal(k1, (B, N, F), dtype=jnp.float32)
    mask = jnp.ones((B, N), dtype=jnp.float32)      # present but unused
    params = init_params(k2, F, H, O)
    ref = readout_layer_multidim_ref(x, params)

    out_f32 = jax.block_until_ready(
        readout_layer_multidim(x, mask, params, dot_dtype=jnp.float32))
    assert out_f32.shape == (B, N, N, O), out_f32.shape
    assert jnp.allclose(out_f32, ref, atol=1e-3, rtol=1e-3), \
        float(jnp.abs(out_f32 - ref).max())

    # shipped bf16 MXU path (f32 accumulation, f32 elementwise): looser check.
    out_bf16 = jax.block_until_ready(readout_layer_multidim(x, mask, params))
    assert out_bf16.shape == (B, N, N, O), out_bf16.shape
    assert jnp.allclose(out_bf16, ref, atol=3e-2, rtol=3e-2), \
        float(jnp.abs(out_bf16 - ref).max())

    # ---- Case 2: small output_dim > 1 (sublane/lane-dense store path) ----
    O2 = 3
    params2 = init_params(k3, F, H, O2)
    ref2 = readout_layer_multidim_ref(x, params2)
    out2 = jax.block_until_ready(
        readout_layer_multidim(x, mask, params2, dot_dtype=jnp.float32))
    assert out2.shape == (B, N, N, O2), out2.shape
    assert jnp.allclose(out2, ref2, atol=1e-3, rtol=1e-3), \
        float(jnp.abs(out2 - ref2).max())

    # ---- Case 3: N*H < 128 -> un-merged output_dim==1 path ----
    B3, N3, F3, H3 = 3, 4, 16, 16
    x3 = jax.random.normal(k4, (B3, N3, F3), dtype=jnp.float32)
    mask3 = jnp.ones((B3, N3), dtype=jnp.float32)
    params3 = init_params(k5, F3, H3, 1)
    ref3 = readout_layer_multidim_ref(x3, params3)
    out3 = jax.block_until_ready(
        readout_layer_multidim(x3, mask3, params3, dot_dtype=jnp.float32))
    assert out3.shape == (B3, N3, N3, 1), out3.shape
    assert jnp.allclose(out3, ref3, atol=1e-3, rtol=1e-3), \
        float(jnp.abs(out3 - ref3).max())

    print("KERNEL_OK")
</pallas_src>

<mosaic_0001>
module attributes {stable_mosaic.version = 11 : i64} {
  func.func @_readout_kernel(%arg0: i32, %arg1: i32, %arg2: memref<1x8x32xf32, #tpu.memory_space<vmem>>, %arg3: memref<32x32xf32, #tpu.memory_space<vmem>>, %arg4: memref<32x32xf32, #tpu.memory_space<vmem>>, %arg5: memref<32x64xf32, #tpu.memory_space<vmem>>, %arg6: memref<1x32xf32, #tpu.memory_space<vmem>>, %arg7: memref<256x8xf32, #tpu.memory_space<vmem>>, %arg8: memref<1x1xf32, #tpu.memory_space<vmem>>, %arg9: memref<1x8x8xf32, #tpu.memory_space<vmem>>, %arg10: memref<1x8x32xf32, #tpu.memory_space<vmem>>, %arg11: memref<1x256xf32, #tpu.memory_space<vmem>>) attributes {dimension_semantics = [#tpu.dimension_semantics<parallel>, #tpu.dimension_semantics<arbitrary>], iteration_bounds = array<i64: 2, 1>, scalar_prefetch = 0 : i64, scratch_operands = 2 : i64, tpu.core_type = #tpu.core_type<tc>, window_params = [{transform_indices = @transform_0, window_bounds = array<i64: 1, 8, 32>}, {pipeline_mode = #tpu.pipeline_mode<synchronous>, transform_indices = @transform_1, window_bounds = array<i64: 32, 32>}, {pipeline_mode = #tpu.pipeline_mode<synchronous>, transform_indices = @transform_2, window_bounds = array<i64: 32, 32>}, {pipeline_mode = #tpu.pipeline_mode<synchronous>, transform_indices = @transform_3, window_bounds = array<i64: 32, 64>}, {pipeline_mode = #tpu.pipeline_mode<synchronous>, transform_indices = @transform_4, window_bounds = array<i64: 1, 32>}, {pipeline_mode = #tpu.pipeline_mode<synchronous>, transform_indices = @transform_5, window_bounds = array<i64: 256, 8>}, {pipeline_mode = #tpu.pipeline_mode<synchronous>, transform_indices = @transform_6, window_bounds = array<i64: 1, 1>}, {transform_indices = @transform_7, window_bounds = array<i64: 1, 8, 8>}]} {
    %c0_i32 = arith.constant 0 : i32
    %0 = arith.cmpi eq, %arg1, %c0_i32 : i32
    %1 = arith.extui %0 : i1 to i32
    %c0_i32_0 = arith.constant 0 : i32
    %2 = arith.cmpi ne, %1, %c0_i32_0 : i32
    scf.if %2 {
      %c0_13 = arith.constant 0 : index
      %c0_14 = arith.constant 0 : index
      %c0_15 = arith.constant 0 : index
      %20 = vector.load %arg2[%c0_13, %c0_14, %c0_15] : memref<1x8x32xf32, #tpu.memory_space<vmem>>, vector<1x8x32xf32>
      %cst_16 = arith.constant 0.000000e+00 : f32
      %21 = vector.broadcast %cst_16 : f32 to vector<1x8x32xf32>
      %22 = arith.maximumf %20, %21 : vector<1x8x32xf32>
      %cst_17 = arith.constant dense<0.000000e+00> : vector<1x32xf32>
      %23 = vector.multi_reduction <add>, %20, %cst_17 [1] : vector<1x8x32xf32> to vector<1x32xf32>
      %cst_18 = arith.constant 1.250000e-01 : f32
      %24 = vector.broadcast %cst_18 : f32 to vector<1x32xf32>
      %25 = arith.mulf %23, %24 : vector<1x32xf32>
      %c0_19 = arith.constant 0 : index
      %c0_20 = arith.constant 0 : index
      %26 = vector.load %arg3[%c0_19, %c0_20] : memref<32x32xf32, #tpu.memory_space<vmem>>, vector<32x32xf32>
      %cst_21 = arith.constant dense<0.000000e+00> : vector<1x32xf32>
      %27 = tpu.matmul %25, %26, %cst_21 {dimension_numbers = #tpu.dot_dimension_numbers<[1], [0], [0], [1], [0, 0, 1, 1], [], []>} : vector<1x32xf32>, vector<32x32xf32>, vector<1x32xf32> -> vector<1x32xf32>
      %cst_22 = arith.constant 0.000000e+00 : f32
      %28 = vector.broadcast %cst_22 : f32 to vector<1x32xf32>
      %29 = arith.maximumf %27, %28 : vector<1x32xf32>
      %c0_23 = arith.constant 0 : index
      %c0_24 = arith.constant 0 : index
      %30 = vector.load %arg4[%c0_23, %c0_24] : memref<32x32xf32, #tpu.memory_space<vmem>>, vector<32x32xf32>
      %cst_25 = arith.constant dense<0.000000e+00> : vector<1x32xf32>
      %31 = tpu.matmul %29, %30, %cst_25 {dimension_numbers = #tpu.dot_dimension_numbers<[1], [0], [0], [1], [0, 0, 1, 1], [], []>} : vector<1x32xf32>, vector<32x32xf32>, vector<1x32xf32> -> vector<1x32xf32>
      %c0_26 = arith.constant 0 : index
      %c0_27 = arith.constant 0 : index
      %32 = vector.load %arg6[%c0_26, %c0_27] : memref<1x32xf32, #tpu.memory_space<vmem>>, vector<1x32xf32>
      %33 = arith.addf %31, %32 : vector<1x32xf32>
      %34 = vector.shape_cast %22 : vector<1x8x32xf32> to vector<8x32xf32>
      %c0_28 = arith.constant 0 : index
      %c0_29 = arith.constant 0 : index
      %35 = vector.load %arg5[%c0_28, %c0_29] : memref<32x64xf32, #tpu.memory_space<vmem>>, vector<32x64xf32>
      %cst_30 = arith.constant dense<0.000000e+00> : vector<8x64xf32>
      %36 = tpu.matmul %34, %35, %cst_30 {dimension_numbers = #tpu.dot_dimension_numbers<[1], [0], [0], [1], [0, 0, 1, 1], [], []>} : vector<8x32xf32>, vector<32x64xf32>, vector<8x64xf32> -> vector<8x64xf32>
      %37 = vector.shape_cast %36 : vector<8x64xf32> to vector<1x8x64xf32>
      %38 = vector.extract_strided_slice %37 {offsets = [0, 0, 0], sizes = [1, 8, 32], strides = [1, 1, 1]} : vector<1x8x64xf32> to vector<1x8x32xf32>
      %39 = vector.extract_strided_slice %37 {offsets = [0, 0, 32], sizes = [1, 8, 32], strides = [1, 1, 1]} : vector<1x8x64xf32> to vector<1x8x32xf32>
      %40 = vector.shape_cast %33 : vector<1x32xf32> to vector<1x1x32xf32>
      %41 = vector.broadcast %40 : vector<1x1x32xf32> to vector<1x8x32xf32>
      %42 = arith.addf %41, %38 : vector<1x8x32xf32>
      %c0_31 = arith.constant 0 : index
      %c0_32 = arith.constant 0 : index
      %c0_33 = arith.constant 0 : index
      %43 = vector.load %arg10[%c0_31, %c0_32, %c0_33] : memref<1x8x32xf32, #tpu.memory_space<vmem>>, vector<1x8x32xf32>
      tpu.vector_store %arg10[%c0_31, %c0_32, %c0_33], %42 {strides = array<i32>} : memref<1x8x32xf32, #tpu.memory_space<vmem>>, vector<1x8x32xf32>,
      %44 = vector.extract_strided_slice %39 {offsets = [0, 0, 0], sizes = [1, 1, 32], strides = [1, 1, 1]} : vector<1x8x32xf32> to vector<1x1x32xf32>
      %45 = vector.shape_cast %44 : vector<1x1x32xf32> to vector<1x32xf32>
      %46 = vector.extract_strided_slice %39 {offsets = [0, 1, 0], sizes = [1, 1, 32], strides = [1, 1, 1]} : vector<1x8x32xf32> to vector<1x1x32xf32>
      %47 = vector.shape_cast %46 : vector<1x1x32xf32> to vector<1x32xf32>
      %48 = vector.extract_strided_slice %39 {offsets = [0, 2, 0], sizes = [1, 1, 32], strides = [1, 1, 1]} : vector<1x8x32xf32> to vector<1x1x32xf32>
      %49 = vector.shape_cast %48 : vector<1x1x32xf32> to vector<1x32xf32>
      %50 = vector.extract_strided_slice %39 {offsets = [0, 3, 0], sizes = [1, 1, 32], strides = [1, 1, 1]} : vector<1x8x32xf32> to vector<1x1x32xf32>
      %51 = vector.shape_cast %50 : vector<1x1x32xf32> to vector<1x32xf32>
      %52 = vector.extract_strided_slice %39 {offsets = [0, 4, 0], sizes = [1, 1, 32], strides = [1, 1, 1]} : vector<1x8x32xf32> to vector<1x1x32xf32>
      %53 = vector.shape_cast %52 : vector<1x1x32xf32> to vector<1x32xf32>
      %54 = vector.extract_strided_slice %39 {offsets = [0, 5, 0], sizes = [1, 1, 32], strides = [1, 1, 1]} : vector<1x8x32xf32> to vector<1x1x32xf32>
      %55 = vector.shape_cast %54 : vector<1x1x32xf32> to vector<1x32xf32>
      %56 = vector.extract_strided_slice %39 {offsets = [0, 6, 0], sizes = [1, 1, 32], strides = [1, 1, 1]} : vector<1x8x32xf32> to vector<1x1x32xf32>
      %57 = vector.shape_cast %56 : vector<1x1x32xf32> to vector<1x32xf32>
      %58 = vector.extract_strided_slice %39 {offsets = [0, 7, 0], sizes = [1, 1, 32], strides = [1, 1, 1]} : vector<1x8x32xf32> to vector<1x1x32xf32>
      %59 = vector.shape_cast %58 : vector<1x1x32xf32> to vector<1x32xf32>
      %60 = tpu.concatenate %45, %47, %49, %51, %53, %55, %57, %59 in 1 : vector<1x32xf32>, vector<1x32xf32>, vector<1x32xf32>, vector<1x32xf32>, vector<1x32xf32>, vector<1x32xf32>, vector<1x32xf32>, vector<1x32xf32> -> vector<1x256xf32>
      %c0_34 = arith.constant 0 : index
      %c0_35 = arith.constant 0 : index
      %61 = vector.load %arg11[%c0_34, %c0_35] : memref<1x256xf32, #tpu.memory_space<vmem>>, vector<1x256xf32>
      tpu.vector_store %arg11[%c0_34, %c0_35], %60 {strides = array<i32>} : memref<1x256xf32, #tpu.memory_space<vmem>>, vector<1x256xf32>,
    } else {
    }
    %c0 = arith.constant 0 : index
    %c0_1 = arith.constant 0 : index
    %c0_2 = arith.constant 0 : index
    %3 = vector.load %arg10[%c0, %c0_1, %c0_2] : memref<1x8x32xf32, #tpu.memory_space<vmem>>, vector<1x8x32xf32>
    %4 = tpu.concatenate %3, %3, %3, %3, %3, %3, %3, %3 in 2 : vector<1x8x32xf32>, vector<1x8x32xf32>, vector<1x8x32xf32>, vector<1x8x32xf32>, vector<1x8x32xf32>, vector<1x8x32xf32>, vector<1x8x32xf32>, vector<1x8x32xf32> -> vector<1x8x256xf32>
    %c0_3 = arith.constant 0 : index
    %c0_4 = arith.constant 0 : index
    %5 = vector.load %arg11[%c0_3, %c0_4] : memref<1x256xf32, #tpu.memory_space<vmem>>, vector<1x256xf32>
    %6 = vector.shape_cast %5 : vector<1x256xf32> to vector<1x1x256xf32>
    %7 = vector.broadcast %6 : vector<1x1x256xf32> to vector<1x8x256xf32>
    %8 = arith.addf %4, %7 : vector<1x8x256xf32>
    %cst = arith.constant 0.000000e+00 : f32
    %9 = vector.broadcast %cst : f32 to vector<1x8x256xf32>
    %10 = arith.maximumf %8, %9 : vector<1x8x256xf32>
    %11 = vector.shape_cast %10 : vector<1x8x256xf32> to vector<8x256xf32>
    %c0_5 = arith.constant 0 : index
    %c0_6 = arith.constant 0 : index
    %12 = vector.load %arg7[%c0_5, %c0_6] : memref<256x8xf32, #tpu.memory_space<vmem>>, vector<256x8xf32>
    %cst_7 = arith.constant dense<0.000000e+00> : vector<8x8xf32>
    %13 = tpu.matmul %11, %12, %cst_7 {dimension_numbers = #tpu.dot_dimension_numbers<[1], [0], [0], [1], [0, 0, 1, 1], [], []>} : vector<8x256xf32>, vector<256x8xf32>, vector<8x8xf32> -> vector<8x8xf32>
    %14 = vector.shape_cast %13 : vector<8x8xf32> to vector<1x8x8xf32>
    %c0_8 = arith.constant 0 : index
    %c0_9 = arith.constant 0 : index
    %15 = vector.load %arg8[%c0_8, %c0_9] : memref<1x1xf32, #tpu.memory_space<vmem>>, vector<1x1xf32>
    %16 = vector.shape_cast %15 : vector<1x1xf32> to vector<1x1x1xf32>
    %17 = vector.broadcast %16 : vector<1x1x1xf32> to vector<1x8x8xf32>
    %18 = arith.addf %14, %17 : vector<1x8x8xf32>
    %c0_10 = arith.constant 0 : index
    %c0_11 = arith.constant 0 : index
    %c0_12 = arith.constant 0 : index
    %19 = vector.load %arg9[%c0_10, %c0_11, %c0_12] : memref<1x8x8xf32, #tpu.memory_space<vmem>>, vector<1x8x8xf32>
    tpu.vector_store %arg9[%c0_10, %c0_11, %c0_12], %18 {strides = array<i32>} : memref<1x8x8xf32, #tpu.memory_space<vmem>>, vector<1x8x8xf32>,
    return
  }
  func.func @transform_0(%arg0: i32, %arg1: i32) -> (i32, i32, i32) {
    %c0_i32 = arith.constant 0 : i32
    %c0_i32_0 = arith.constant 0 : i32
    %c0_i32_1 = arith.constant 0 : i32
    return %arg0, %c0_i32, %c0_i32_0 : i32, i32, i32
  }
  func.func @transform_1(%arg0: i32, %arg1: i32) -> (i32, i32) {
    %c0_i32 = arith.constant 0 : i32
    %c0_i32_0 = arith.constant 0 : i32
    %c0_i32_1 = arith.constant 0 : i32
    return %c0_i32, %c0_i32_0 : i32, i32
  }
  func.func @transform_2(%arg0: i32, %arg1: i32) -> (i32, i32) {
    %c0_i32 = arith.constant 0 : i32
    %c0_i32_0 = arith.constant 0 : i32
    %c0_i32_1 = arith.constant 0 : i32
    return %c0_i32, %c0_i32_0 : i32, i32
  }
  func.func @transform_3(%arg0: i32, %arg1: i32) -> (i32, i32) {
    %c0_i32 = arith.constant 0 : i32
    %c0_i32_0 = arith.constant 0 : i32
    %c0_i32_1 = arith.constant 0 : i32
    return %c0_i32, %c0_i32_0 : i32, i32
  }
  func.func @transform_4(%arg0: i32, %arg1: i32) -> (i32, i32) {
    %c0_i32 = arith.constant 0 : i32
    %c0_i32_0 = arith.constant 0 : i32
    %c0_i32_1 = arith.constant 0 : i32
    return %c0_i32, %c0_i32_0 : i32, i32
  }
  func.func @transform_5(%arg0: i32, %arg1: i32) -> (i32, i32) {
    %c0_i32 = arith.constant 0 : i32
    %c0_i32_0 = arith.constant 0 : i32
    %c0_i32_1 = arith.constant 0 : i32
    return %c0_i32, %c0_i32_0 : i32, i32
  }
  func.func @transform_6(%arg0: i32, %arg1: i32) -> (i32, i32) {
    %c0_i32 = arith.constant 0 : i32
    %c0_i32_0 = arith.constant 0 : i32
    %c0_i32_1 = arith.constant 0 : i32
    return %c0_i32, %c0_i32_0 : i32, i32
  }
  func.func @transform_7(%arg0: i32, %arg1: i32) -> (i32, i32, i32) {
    %c0_i32 = arith.constant 0 : i32
    %c0_i32_0 = arith.constant 0 : i32
    return %arg0, %arg1, %c0_i32 : i32, i32, i32
  }
}

</mosaic_0001>

<bundles_post_ra>
// kernel: tpu_custom_call.1
= control target key start
LH: loop header
LB: loop body
LE: loop exit
PB: predicated region body
PF: predicated region fallthrough
CT: control target
= control target key end

     0   :  { %s1095_s0 = inlined_call_operand.vmem [shape: f32[2,8,32], index: 0, kind: input, shape index: {}]   ;;  %s1096_s1 = inlined_call_operand.vmem [shape: f32[32,32], index: 1, kind: input, shape index: {}]   ;;  %s1097_s2 = inlined_call_operand.vmem [shape: f32[32,32], index: 2, kind: input, shape index: {}]   ;;  %s1098_s3 = inlined_call_operand.vmem [shape: f32[32,64], index: 3, kind: input, shape index: {}]   ;;  %s1099_s4 = inlined_call_operand.vmem [shape: f32[1,32], index: 4, kind: input, shape index: {}]   ;;  %s1100_s5 = inlined_call_operand.vmem [shape: f32[256,8], index: 5, kind: input, shape index: {}]   ;;  %s1101_s6 = inlined_call_operand.<no memory space> [shape: f32[1,1], index: 6, kind: input, shape index: {}]   ;;  %s1102_s7 = inlined_call_operand.hbm [shape: f32[2,8,8], index: 7, kind: output, shape index: {}]  }
   0x1   :  { %v12_v0 = vstv %s1101_s6 }
   0x2   :  { %13 = vst [vmem:[#allocation4] sm:$0x1] %v12_v0 }
   0x3   :  { %14 = vsyncpa [#allocation6], 0 }
   0x4   :  { %16 = vsyncpa [#allocation6 + $0x1], 0  ;;  %s834_s26 = smov 0   ;;  %s836_s27 = smov 0  }
   0x5   :  { %s838_s28 = smov 0   ;;  %s840_s29 = smov 0  }
   0x6   :  { %s842_s30 = smov 0   ;;  %s844_s8 = smov 0  }
   0x7 LB: > { %s632_s6 = sadd.s32 4294967295, %s785_s8   ;;  %s633_s9 = sadd.s32 4294967294, %s785_s8   ;;  %s785_s8 = sphi %s844_s8, %s22_s8   ;;  %s781_s30 = sphi %s842_s30, %s1109_s30   ;;  %s777_s29 = sphi %s840_s29, %s1108_s29   ;;  %s773_s28 = sphi %s838_s28, %s1107_s28   ;;  %s769_s27 = sphi %s836_s27, %s1106_s27   ;;  %s765_s26 = sphi %s834_s26, %s1105_s26  }
   0x8   : > { %s34_s10 = sadd.s32 1, %s781_s30  ;;  %s195_s11 = sadd.s32 1, %s773_s28 }
   0x9   : > { %p36_p0 = scmp.ge.s32.totalorder %s34_s10, 2  ;;  %p205_p1 = scmp.ne.s32.totalorder %s773_s28, %s769_s27 }
   0xa   : > { %p206_p2 = scmp.eq.s32.totalorder %s632_s6, 1  ;;  %p211_p3 = scmp.ne.s32.totalorder %s769_s27, %s765_s26 }
   0xb   : > { %s1111_s10 = smov (%p36_p0, %s34_s10), 0  ;;  %p212_p5 = scmp.eq.s32.totalorder %s633_s9, 1 }
   0xc   : > { %p874_p4 = por %p206_p2, %p205_p1  ;;  %s190_s13 = ssub.s32 %s781_s30, %s1111_s10 }
   0xd   : > { %p636_p6 = scmp.ge.s32.totalorder %s785_s8, 1  ;;  %p193_p7 = scmp.eq.s32.totalorder %s190_s13, 0 }
   0xe   : > { %p881_p8 = por %p212_p5, %p211_p3  ;;  %p255_p9 = scmp.lt.s32.totalorder %s785_s8, 3 }
   0xf   : > { %s887_s15 = scalar_select %p193_p7, %s773_s28, %s195_s11  }
  0x10   : > { %p256_p10 = pnand %p636_p6, %p255_p9 }
  0x11   : > { %p286_p11 = scmp.lt.s32.totalorder (!%p256_p10), %s777_s29, 1  ;;  %s788_s18 = smov (!%p256_p10), 32  }
  0x12   : > { %259 = sbr.rel (%p256_p10) target bundleno = 573 (0x23d), region = 48  ;;  %s789_s19 = smov (!%p256_p10), 64  }
  0x13   : > { %s283_s16 = sand.u32 (!%p256_p10), 1, %s769_s27   ;;  %s727_s13 = scalar_lea.hbm (!%p256_p10), %s1102_s7, 16 }
  0x14   : > { %s548_s25 = scalar_lea.sflag (!%p256_p10), [#allocation6], %s283_s16 }
  0x17   : > { %v364_v1 = vld [vmem:[%s1098_s3 + $0x18] sm:$0xff]  ;;  %v363_v2 = vld [vmem:[%s1098_s3 + $0x10] sm:$0xff]  ;;  %v362_v5 = vld [vmem:[%s1098_s3 + $0x8] sm:$0xff]  ;;  %s287_s6 = scalar_select %p286_p11, %s777_s29, 1  ;;  %vm296_vm0 = vcmask 261120   ;;  %vm420_vm1 = vcmask 523264   ;;  %v433_v40 = vlaneseq }
  0x18   : > { %380 = vmatpush.msra.mxu2 %v364_v1  ;;  %v308_v3 = vld [vmem:[%s1096_s1 + $0x18] sm:$0xff]  ;;  %v307_v4 = vld [vmem:[%s1096_s1 + $0x10] sm:$0xff]  ;;  %v306_v6 = vld [vmem:[%s1096_s1 + $0x8] sm:$0xff]  ;;  %vm422_vm2 = vcmask 785408   ;;  %vm430_vm3 = vcmask 1040384   ;;  %vm545_vm5 = vcmask 64512  }
  0x19   : > { %324 = vmatpush.msra.mxu1 %v308_v3  ;;  %v361_v7 = vld [vmem:[%s1098_s3] sm:$0xff]  ;;  %s638_s17 = sshll.u32 %s287_s6, 3  ;;  %v336_v10 = vld [vmem:[%s1097_s2 + $0x18] sm:$0xff]  ;;  %v335_v20 = vld [vmem:[%s1097_s2 + $0x10] sm:$0xff]  ;;  %vm435_vm4 = vcmp.lt.s32.totalorder %v433_v40, 256 }
  0x1a   : > { %381 = vmatpush.msra.mxu2 %v363_v2  ;;  %s289_s20 = scalar_lea.vmem %s1095_s0, %s638_s17  ;;  %v305_v8 = vld [vmem:[%s1096_s1] sm:$0xff]  ;;  %v334_v21 = vld [vmem:[%s1097_s2 + $0x8] sm:$0xff]  ;;  %s787_s17 = smov 96   ;;  %v480_v54 = vld [vmem:[%s1100_s5 + $0x78] sm:$0xff] }
  0x1b   : > { %325 = vmatpush.msra.mxu1 %v307_v4  ;;  %v294_v9 = vld [vmem:[%s289_s20] sm:$0xff]  ;;  %v496_v55 = vld [vmem:[%s1100_s5 + $0xf8] sm:$0xff]  ;;  %v479_v56 = vld [vmem:[%s1100_s5 + $0x70] sm:$0xff]  ;;  %497 = vmatpush.msra.mxu3 %v480_v54 }
  0x1c   : > { %382 = vmatpush.msra.mxu2 %v362_v5  ;;  %v295_v11 = vmax.f32 %v294_v9, 0.0  ;;  %v297_v12 = vsel %vm296_vm0, %v294_v9, 0.0  ;;  %v333_v22 = vld [vmem:[%s1097_s2] sm:$0xff]  ;;  %517 = vmatpush.msra.mxu0 %v496_v55  ;;  %v495_v57 = vld [vmem:[%s1100_s5 + $0xf0] sm:$0xff]  ;;  %v478_v58 = vld [vmem:[%s1100_s5 + $0x68] sm:$0xff] }
  0x1d   : > { %326 = vmatpush.msra.mxu1 %v306_v6  ;;  %v298_v13 = vrot.slane %v297_v12, 4  ;;  %v337_v48 = vld [vmem:[%s1099_s4] sm:$0x1]  ;;  %v494_v59 = vld [vmem:[%s1100_s5 + $0xe8] sm:$0xff]  ;;  %498 = vmatpush.msra.mxu3 %v479_v56  ;;  %v476_v62 = vld [vmem:[%s1100_s5 + $0x58] sm:$0xff] }
  0x1e   : > { %383 = vmatpush.msra.mxu2 %v361_v7  ;;  %518 = vmatpush.msra.mxu0 %v495_v57  ;;  %v477_v60 = vld [vmem:[%s1100_s5 + $0x60] sm:$0xff]  ;;  %v492_v63 = vld [vmem:[%s1100_s5 + $0xd8] sm:$0xff]  ;;  %v475_v0 = vld [vmem:[%s1100_s5 + $0x50] sm:$0xff] }
  0x1f   : > { %327 = vmatpush.msra.mxu1 %v305_v8  ;;  %641 = vmatmul.msk.f32.vlgmr.msra.gmra.mxu2 %vm296_vm0, %v295_v11  ;;  %v299_v14 = vadd.f32 %v298_v13, %v297_v12  ;;  %v493_v61 = vld [vmem:[%s1100_s5 + $0xe0] sm:$0xff]  ;;  %v491_v1 = vld [vmem:[%s1100_s5 + $0xd0] sm:$0xff]  ;;  %v474_v2 = vld [vmem:[%s1100_s5 + $0x48] sm:$0xff] }
  0x20   : > { %499 = vmatpush.msra.mxu3 %v478_v58  ;;  %519 = vmatpush.msra.mxu0 %v494_v59  ;;  %v490_v3 = vld [vmem:[%s1100_s5 + $0xc8] sm:$0xff]  ;;  %v473_v4 = vld [vmem:[%s1100_s5 + $0x40] sm:$0xff]  ;;  %v472_v6 = vld [vmem:[%s1100_s5 + $0x38] sm:$0xff] }
  0x21   : > { %353 = vmatpush.msrb.mxu1 %v336_v10  ;;  %v300_v15 = vrot.slane %v299_v14, 2  ;;  %v489_v5 = vld [vmem:[%s1100_s5 + $0xc0] sm:$0xff]  ;;  %v488_v7 = vld [vmem:[%s1100_s5 + $0xb8] sm:$0xff]  ;;  %v471_v8 = vld [vmem:[%s1100_s5 + $0x30] sm:$0xff] }
  0x22   : > { %500 = vmatpush.msra.mxu3 %v477_v60  ;;  %520 = vmatpush.msra.mxu0 %v493_v61  ;;  %v487_v9 = vld [vmem:[%s1100_s5 + $0xb0] sm:$0xff]  ;;  %v470_v10 = vld [vmem:[%s1100_s5 + $0x28] sm:$0xff]  ;;  %v469_v12 = vld [vmem:[%s1100_s5 + $0x20] sm:$0xff] }
  0x23   : > { %v301_v16 = vadd.f32 %v300_v15, %v299_v14  ;;  %354 = vmatpush.msrb.mxu1 %v335_v20  ;;  %v486_v11 = vld [vmem:[%s1100_s5 + $0xa8] sm:$0xff]  ;;  %v485_v13 = vld [vmem:[%s1100_s5 + $0xa0] sm:$0xff]  ;;  %v468_v14 = vld [vmem:[%s1100_s5 + $0x18] sm:$0xff] }
  0x24   : > { %501 = vmatpush.msra.mxu3 %v476_v62  ;;  %521 = vmatpush.msra.mxu0 %v492_v63  ;;  %v484_v15 = vld [vmem:[%s1100_s5 + $0x98] sm:$0xff]  ;;  %v465_v20 = vld [vmem:[%s1100_s5] sm:$0xff] }
  0x25   : > { %v302_v17 = vrot.slane %v301_v16, 1  ;;  %355 = vmatpush.msrb.mxu1 %v334_v21  ;;  %v481_v21 = vld [vmem:[%s1100_s5 + $0x80] sm:$0xff] }
  0x26   : > { %502 = vmatpush.msra.mxu3 %v475_v0  ;;  %522 = vmatpush.msra.mxu0 %v491_v1 }
  0x27   : > { %v303_v18 = vadd.f32 %v302_v17, %v301_v16  ;;  %356 = vmatpush.msrb.mxu1 %v333_v22  ;;  %v467_v16 = vld [vmem:[%s1100_s5 + $0x10] sm:$0xff]  ;;  %v706_v22 = vld [vmem:[#allocation4] ss:$0 sm:$0xff] }
  0x28   : > { %503 = vmatpush.msra.mxu3 %v474_v2  ;;  %523 = vmatpush.msra.mxu0 %v490_v3  ;;  %v483_v17 = vld [vmem:[%s1100_s5 + $0x90] sm:$0xff] }
  0x29   : > { %v304_v19 = vmul.f32 0.125, %v303_v18  ;;  %v466_v18 = vld [vmem:[%s1100_s5 + $0x8] sm:$0xff] }
  0x2a   : > { %504 = vmatpush.msra.mxu3 %v473_v4  ;;  %524 = vmatpush.msra.mxu0 %v489_v5 }
  0x2b   : > { %639 = vmatmul.msk.f32.vlgmr.msra.gmra.mxu1 %vm296_vm0, %v304_v19  ;;  %v482_v19 = vld [vmem:[%s1100_s5 + $0x88] sm:$0xff] }
  0x2c   : > { %505 = vmatpush.msra.mxu3 %v472_v6  ;;  %525 = vmatpush.msra.mxu0 %v488_v7 }
  0x2e   : > { %506 = vmatpush.msra.mxu3 %v471_v8  ;;  %526 = vmatpush.msra.mxu0 %v487_v9 }
  0x30   : > { %507 = vmatpush.msra.mxu3 %v470_v10  ;;  %527 = vmatpush.msra.mxu0 %v486_v11 }
  0x32   : > { %508 = vmatpush.msra.mxu3 %v469_v12  ;;  %528 = vmatpush.msra.mxu0 %v485_v13 }
  0x34   : > { %509 = vmatpush.msra.mxu3 %v468_v14  ;;  %529 = vmatpush.msra.mxu0 %v484_v15 }
  0x36   : > { %510 = vmatpush.msra.mxu3 %v467_v16  ;;  %530 = vmatpush.msra.mxu0 %v483_v17 }
  0x38   : > { %511 = vmatpush.msra.mxu3 %v466_v18  ;;  %531 = vmatpush.msra.mxu0 %v482_v19 }
  0x3a   : > { %512 = vmatpush.msra.mxu3 %v465_v20  ;;  %532 = vmatpush.msra.mxu0 %v481_v21 }
  0xa2   : > { %v385_v23 = vpop.f32.mrf.mxu2 }
  0xa3   : > { %v405_v24 = vrot.slane %v385_v23, 4  ;;  %392 = vrot.lane.b32.xlu1 %v385_v23, %s787_s17  ;;  %v397_v25 = vrot.slane %v385_v23, 2  ;;  %v415_v26 = vrot.slane %v385_v23, 7  ;;  %v411_v28 = vrot.slane %v385_v23, 6 }
  0xa4   : > { %v401_v29 = vrot.slane %v385_v23, 3  ;;  %v395_v34 = vrot.slane %v385_v23, 1  ;;  %v409_v35 = vrot.slane %v385_v23, 5 }
  0xa5   : > { %406 = vrot.lane.b32.xlu0 %v405_v24, %s787_s17  ;;  %398 = vrot.lane.b32.xlu2 %v397_v25, %s788_s18 }
  0xa8   : > { %v329_v27 = vpop.f32.mrf.mxu1 }
  0xa9   : > { %v332_v30 = vmax.f32 %v329_v27, 0.0 }
  0xab   : > { %416 = vrot.lane.b32.xlu1 %v415_v26, %s789_s19  ;;  %640 = vmatmul.msk.f32.vlgmr.msrb.gmra.mxu1 %vm296_vm0, %v332_v30 }
  0xad   : > { %412 = vrot.lane.b32.xlu0 %v411_v28, %s788_s18  ;;  %402 = vrot.lane.b32.xlu2 %v401_v29, %s789_s19 }
  0xff   : > { %v399_v31 = vpop.permute.xlu2 %398 }
 0x107   : > { %v403_v41 = vpop.permute.xlu2 %402 }
 0x115   : > { %v393_v32 = vpop.permute.xlu1 %392 }
 0x116   : > { %v419_v36 = vsel %vm296_vm0, %v393_v32, %v395_v34 }
 0x117   : > { %v407_v33 = vpop.permute.xlu0 %406  ;;  %v421_v38 = vsel %vm420_vm1, %v419_v36, %v399_v31 }
 0x118   : > { %v424_v37 = vsel %vm296_vm0, %v407_v33, %v409_v35  ;;  %v423_v45 = vsel %vm422_vm2, %v421_v38, %v403_v41 }
 0x11d   : > { %v417_v39 = vpop.permute.xlu1 %416 }
 0x11f   : > { %v413_v42 = vpop.permute.xlu0 %412 }
 0x120   : > { %v425_v43 = vsel %vm420_vm1, %v424_v37, %v413_v42 }
 0x121   : > { %v426_v44 = vsel %vm422_vm2, %v425_v43, %v417_v39 }
 0x122   : > { %v429_v46 = vrot.slane %v426_v44, 7 }
 0x124   : > { %v431_v47 = vsel %vm430_vm3, %v423_v45, %v429_v46 }
 0x125   : > { %437 = vst.msk [vmem:[#allocation3] sm:$0x3] %vm435_vm4, %v431_v47 }
 0x128   : > { %v358_v49 = vpop.f32.mrf.mxu1 }
 0x129   : > { %v359_v50 = vadd.f32 %v358_v49, %v337_v48 }
 0x12b   : > { %v388_v51 = vperm.slane %v359_v50, 0 }
 0x12c   : > { %v455_v25 = vld [vmem:[#allocation3] sm:$0x3] }
 0x12d   : > { %v389_v52 = vadd.f32 %v388_v51, %v385_v23  ;;  %v790_v23 = vmov 0   ;;  %v457_v30 = vperm.slane %v455_v25, 0  ;;  %v458_v31 = vperm.slane %v455_v25, 1 }
 0x12e   : > { %705 = vset.pattern.permute.xlu0 %v790_v23 }
 0x12f   : > { %390 = vst.msk [vmem:[#allocation2] sm:$0xff] %vm296_vm0, %v389_v52 }
 0x136   : > { %v950_v53 = vld [vmem:[#allocation2] sm:$0xff] }
 0x137   : > { %446 = vrot.lane.b32.xlu2 %v950_v53, %s787_s17  ;;  %443 = vrot.lane.b32.xlu1 %v950_v53, %s789_s19  ;;  %s637_s17 = sshll.u32 %s283_s16, 3 }
 0x138   : > { %440 = vrot.lane.b32.xlu0 %v950_v53, %s788_s18  ;;  %s643_s18 = sshll.u32 %s777_s29, 3  ;;  %s285_s22 = scalar_lea.vmem [#allocation5], %s637_s17 }
 0x139   : > { %s559_s21 = scalar_lea.hbm %s1102_s7, %s643_s18  ;;  %s561_s23 = sshll.u32 %s285_s22, 4  ;;  %s562_s23 = int_to_ptr.vmem [resolvable:$true] %s561_s23 }
 0x13a   : > { %s563_s24 = sshll.u32 %s559_s21, 4  ;;  %s564_s24 = int_to_ptr.hbm [resolvable:$true] %s563_s24 }
 0x13b   : > { %s721_s6 = sshra.s32 %s564_s24, 4  ;;  %s722_s6 = int_to_ptr.hbm [resolvable:$true] %s721_s6 }
 0x13c   : > { %s723_s29 = scalar_lea.hbm %s722_s6, 8  ;;  %p728_p1 = scmp.lt.s32.totalorder %s722_s6, %s1102_s7 }
 0x13d   : > { %p724_p12 = scmp.ne.s32.totalorder %s722_s6, %s723_s29  ;;  %p729_p2 = scmp.lt.s32.totalorder %s727_s13, %s723_s29 }
 0x13f   : > { %p725_p13 = pnand %p724_p12, %p874_p4  ;;  %p730_p3 = por %p729_p2, %p728_p1 }
 0x140   : > { %541 = vperm.xlu0 %705, %v706_v22  }
 0x141   : > { %p726_p0 = pneg %p725_p13 }
 0x143   : > { %p731_p5 = pnand %p730_p3, %p726_p0 }
 0x191   : > { %v447_v28 = vpop.permute.xlu2 %446 }
 0x1a9   : > { %v444_v24 = vpop.permute.xlu1 %443 }
 0x1aa   : > { %v441_v26 = vpop.permute.xlu0 %440 }
 0x1ab   : > { %v450_v27 = vsel %vm296_vm0, %v950_v53, %v441_v26 }
 0x1ac   : > { %v452_v29 = vsel %vm420_vm1, %v450_v27, %v444_v24 }
 0x1ad   : > { %v454_v32 = vsel %vm422_vm2, %v452_v29, %v447_v28 }
 0x1ae   : > { %v461_v33 = vadd.f32 %v457_v30, %v454_v32  ;;  %v462_v34 = vadd.f32 %v458_v31, %v454_v32 }
 0x1b0   : > { %v463_v35 = vmax.f32 %v461_v33, 0.0  ;;  %v464_v36 = vmax.f32 %v462_v34, 0.0 }
 0x1b2   : > { %513 = vmatmul.f32.vlgmr.msra.gmra.mxu3 %v463_v35  ;;  %533 = vmatmul.f32.vlgmr.msra.gmra.mxu0 %v464_v36  ;;  %v542_v37 = vpop.permute.xlu0 %541 }
 0x22f   : > { %v534_v38 = vpop.f32.mrf.mxu0 }
 0x235   : > { %v514_v39 = vpop.f32.mrf.mxu3 }
 0x236   : > { %v535_v40 = vadd.f32 %v534_v38, %v514_v39 }
 0x238   : > { %v544_v41 = vadd.f32 %v542_v37, %v535_v40 }
 0x23a   : > { %546 = vst.msk [vmem:[%s285_s22] sm:$0xff] %vm545_vm5, %v544_v41 }
 0x23b   : > { %734 = shalt.err (!%p731_p5)
}
 0x23c   : > { %646 = dma.vmem_to_hbm [thread:$0]  (%p874_p4), %s562_s23, 128, %s564_s24, %s548_s25  }
 0x23d PF: > { %p652_p6 = scmp.ge.s32.totalorder %s785_s8, 2  ;;  %s575_s16 = sand.u32 1, %s765_s26  }
 0x23e   : > { %s576_s19 = scalar_lea.sflag [#allocation6], %s575_s16 }
 0x23f   : > { %p649_p7 = pnand %p652_p6, %p881_p8 }
 0x241   : > { %p650_p9 = pneg %p649_p7 }
 0x243   : > { %760 = dma.done.wait (%p650_p9), %s576_s19, 128  }
 0x244   : > { %762 = vsyncadd (%p650_p9), %s576_s19, 4294967168  ;;  %s22_s8 = sadd.s32 1, %s785_s8   ;;  %s1105_s26 = smov %s769_s27 }
 0x245   : > { %p19_p10 = scmp.ge.s32.totalorder %s22_s8, 4   ;;  %s1106_s27 = smov %s773_s28 }
 0x246   : > { %s1107_s28 = smov %s887_s15  ;;  %s1108_s29 = smov %s781_s30 }
 0x247   : > { %s1109_s30 = smov %s1111_s10  ;;  %21 = sbr.rel (!%p19_p10) target bundleno = 7 (0x7), region = 87 }
 0x24c   :  { %582 = vsyncpa [#allocation6], 1 }
 0x24d   :  { %584 = vsyncpa [#allocation6 + $0x1], 1 }

</bundles_post_ra>
